<compile_context>
chip_gen: v5e
topology: v5e:2x2
jax: 0.10.0
libtpu: 0.0.40
codegen_flags: <defaults>
</compile_context>

<pallas_src>
import functools

import jax
import jax.numpy as jnp
from jax.experimental import pallas as pl
from jax.experimental.pallas import tpu as pltpu


def _focal_loss_kernel(x_ref, t_ref, out_ref, *, alpha, gamma, spatial):
    """x_ref: (1, C, TL) logits, t_ref: (1, 1, TL) int32 targets,
    out_ref: (1, 1, TL) f32 per-lane loss partial sums (accumulated over j)."""
    j = pl.program_id(1)
    tile_l = x_ref.shape[-1]

    @pl.when(j == 0)
    def _():
        out_ref[...] = jnp.zeros_like(out_ref)

    x = x_ref[...].astype(jnp.float32)                       # (1, C, TL)
    t = t_ref[...]                                            # (1, 1, TL)

    # Lane validity for the ragged tail of the spatial axis (grid = cdiv(L, TL)).
    lane = jax.lax.broadcasted_iota(jnp.int32, (1, 1, tile_l), 2) + j * tile_l
    valid = lane < spatial                                    # (1, 1, TL) bool
    # Mask BEFORE exp/log: out-of-bounds lanes hold unspecified bits.
    x = jnp.where(valid, x, 0.0)

    # Numerically stable log-softmax over the class (sublane) axis.
    m = jnp.max(x, axis=1, keepdims=True)                     # (1, 1, TL)
    z = x - m                                                 # (1, C, TL)
    e = jnp.exp(z)                                            # single big EUP exp
    s = jnp.sum(e, axis=1, keepdims=True)                     # (1, 1, TL)

    # Gather target class via class-iota compare (no dynamic gather on TPU vregs).
    cls = jax.lax.broadcasted_iota(jnp.int32, x.shape, 1)     # (1, C, TL)
    hit = cls == t
    z_t = jnp.sum(jnp.where(hit, z, 0.0), axis=1, keepdims=True)
    e_t = jnp.sum(jnp.where(hit, e, 0.0), axis=1, keepdims=True)

    logpt = z_t - jnp.log(s)                                  # log p_t
    pt = e_t / s                                              # p_t (no 2nd exp)

    one_minus_pt = 1.0 - pt
    if float(gamma).is_integer() and 0.0 <= gamma <= 8.0:
        # Integer-gamma fast path: plain VPU multiplies instead of log+exp pow.
        w = jnp.ones_like(pt)
        for _ in range(int(gamma)):
            w = w * one_minus_pt
    else:
        w = one_minus_pt ** gamma

    loss = (-alpha) * w * logpt                               # (1, 1, TL)
    out_ref[...] += jnp.where(valid, loss, 0.0)


def _choose_tile_l(L, C, max_block_bytes=2 * 1024 * 1024):
    """Largest lane tile (multiple of 128, or full L) whose logits block fits
    the per-block VMEM budget (keeps total VMEM well under v7x's 64 MiB)."""
    lanes = max_block_bytes // (C * 4)
    if lanes >= L:
        return L
    return max(128, (lanes // 128) * 128)


def focal_loss(inputs, targets, alpha=1.0, gamma=2.0, reduction="mean",
               ignore_index=None, max_block_bytes=2 * 1024 * 1024):
    """Focal loss matching PyTorch FocalLoss.forward semantics.

    inputs : (N, C, *spatial) float logits, or (M, C)
    targets: (N, *spatial)    int class ids, or (M,)
    """
    # TODO(synk): ignore_index boolean filtering (dynamic-shape compaction) not
    # implemented; the module's default (ignore_index=None) path is reproduced.
    assert ignore_index is None

    if inputs.ndim > 2:
        n, c = inputs.shape[0], inputs.shape[1]
        x = inputs.reshape(n, c, -1)                  # (N, C, L) — no transpose pass
        t = targets.reshape(n, -1)
    else:
        # (M, C) classification layout: one transpose to put classes on sublanes.
        m, c = inputs.shape
        x = jnp.transpose(inputs, (1, 0)).reshape(1, c, m)
        t = targets.reshape(1, -1)
        n = 1

    L = x.shape[2]
    t = t.reshape(n, 1, L).astype(jnp.int32)

    tile_l = _choose_tile_l(L, c, max_block_bytes)
    n_j = pl.cdiv(L, tile_l)

    kernel = functools.partial(_focal_loss_kernel, alpha=float(alpha),
                               gamma=float(gamma), spatial=L)

    partial_sums = pl.pallas_call(
        kernel,
        out_shape=jax.ShapeDtypeStruct((n, 1, tile_l), jnp.float32),
        grid_spec=pltpu.PrefetchScalarGridSpec(
            num_scalar_prefetch=0,
            grid=(n, n_j),
            in_specs=[
                pl.BlockSpec((1, c, tile_l), lambda i, j: (i, 0, j)),
                pl.BlockSpec((1, 1, tile_l), lambda i, j: (i, 0, j)),
            ],
            # Output block is the accumulator: resident across the j axis.
            out_specs=pl.BlockSpec((1, 1, tile_l), lambda i, j: (i, 0, 0)),
        ),
        compiler_params=pltpu.CompilerParams(
            dimension_semantics=("parallel", "arbitrary"),
            vmem_limit_bytes=48 * 1024 * 1024),
    )(x, t)

    loss_sum = jnp.sum(partial_sums)
    total = n * L
    if reduction == "mean":
        return loss_sum / jnp.float32(total)
    elif reduction == "sum":
        return loss_sum
    else:
        raise NotImplementedError("reduction='none' not supported in this kernel")


def _focal_loss_ref(inputs, targets, alpha=1.0, gamma=2.0):
    n, c = inputs.shape[0], inputs.shape[1]
    x = jnp.transpose(inputs.reshape(n, c, -1), (0, 2, 1)).reshape(-1, c)
    t = targets.reshape(-1)
    logp = jax.nn.log_softmax(x, axis=1)
    logpt = jnp.take_along_axis(logp, t[:, None], axis=1)[:, 0]
    pt = jnp.exp(logpt)
    loss = -alpha * (1.0 - pt) ** gamma * logpt
    return loss.mean()


if __name__ == "__main__":
    key = jax.random.PRNGKey(0)
    k1, k2 = jax.random.split(key)

    N, C, H, W = 2, 4, 16, 16
    logits = jax.random.normal(k1, (N, C, H, W), dtype=jnp.float32)
    targets = jax.random.randint(k2, (N, H, W), 0, C, dtype=jnp.int32)

    out = focal_loss(logits, targets, alpha=1.0, gamma=2.0, reduction="mean")
    out = jax.block_until_ready(out)

    ref = _focal_loss_ref(logits, targets)
    assert jnp.allclose(out, ref, rtol=1e-5, atol=1e-5), (out, ref)

    print("KERNEL_OK")
</pallas_src>

<mosaic_0001>
module attributes {stable_mosaic.version = 11 : i64} {
  func.func @_focal_loss_kernel(%arg0: i32, %arg1: i32, %arg2: memref<1x4x256xf32, #tpu.memory_space<vmem>>, %arg3: memref<1x1x256xi32, #tpu.memory_space<vmem>>, %arg4: memref<1x1x256xf32, #tpu.memory_space<vmem>>) attributes {dimension_semantics = [#tpu.dimension_semantics<parallel>, #tpu.dimension_semantics<arbitrary>], iteration_bounds = array<i64: 2, 1>, scalar_prefetch = 0 : i64, scratch_operands = 0 : i64, tpu.core_type = #tpu.core_type<tc>, window_params = [{transform_indices = @transform_0, window_bounds = array<i64: 1, 4, 256>}, {transform_indices = @transform_1, window_bounds = array<i64: 1, 1, 256>}, {transform_indices = @transform_2, window_bounds = array<i64: 1, 1, 256>}]} {
    %c0_i32 = arith.constant 0 : i32
    %0 = arith.cmpi eq, %arg1, %c0_i32 : i32
    %1 = arith.extui %0 : i1 to i32
    %c0_i32_0 = arith.constant 0 : i32
    %2 = arith.cmpi ne, %1, %c0_i32_0 : i32
    scf.if %2 {
      %cst_23 = arith.constant 0.000000e+00 : f32
      %49 = vector.broadcast %cst_23 : f32 to vector<1x1x256xf32>
      %c0_24 = arith.constant 0 : index
      %c0_25 = arith.constant 0 : index
      %c0_26 = arith.constant 0 : index
      %50 = vector.load %arg4[%c0_24, %c0_25, %c0_26] : memref<1x1x256xf32, #tpu.memory_space<vmem>>, vector<1x1x256xf32>
      tpu.vector_store %arg4[%c0_24, %c0_25, %c0_26], %49 {strides = array<i32>} : memref<1x1x256xf32, #tpu.memory_space<vmem>>, vector<1x1x256xf32>,
    } else {
    }
    %c0 = arith.constant 0 : index
    %c0_1 = arith.constant 0 : index
    %c0_2 = arith.constant 0 : index
    %3 = vector.load %arg2[%c0, %c0_1, %c0_2] : memref<1x4x256xf32, #tpu.memory_space<vmem>>, vector<1x4x256xf32>
    %c0_3 = arith.constant 0 : index
    %c0_4 = arith.constant 0 : index
    %c0_5 = arith.constant 0 : index
    %4 = vector.load %arg3[%c0_3, %c0_4, %c0_5] : memref<1x1x256xi32, #tpu.memory_space<vmem>>, vector<1x1x256xi32>
    %5 = tpu.iota {dimensions = array<i32: 2>} : vector<1x1x256xi32>
    %c256_i32 = arith.constant 256 : i32
    %6 = arith.muli %arg1, %c256_i32 : i32
    %7 = vector.broadcast %6 : i32 to vector<1x1x256xi32>
    %8 = arith.addi %5, %7 : vector<1x1x256xi32>
    %c256_i32_6 = arith.constant 256 : i32
    %9 = vector.broadcast %c256_i32_6 : i32 to vector<1x1x256xi32>
    %10 = arith.cmpi slt, %8, %9 : vector<1x1x256xi32>
    %cst = arith.constant 0.000000e+00 : f32
    %11 = vector.shape_cast %10 : vector<1x1x256xi1> to vector<1x1x256xi1>
    %12 = vector.broadcast %11 : vector<1x1x256xi1> to vector<1x4x256xi1>
    %13 = vector.broadcast %cst : f32 to vector<1x4x256xf32>
    %14 = arith.select %12, %3, %13 : vector<1x4x256xi1>, vector<1x4x256xf32>
    %cst_7 = arith.constant dense<0xFF800000> : vector<1x256xf32>
    %15 = vector.multi_reduction <maximumf>, %14, %cst_7 [1] : vector<1x4x256xf32> to vector<1x256xf32>
    %16 = vector.shape_cast %15 : vector<1x256xf32> to vector<1x1x256xf32>
    %17 = vector.broadcast %16 : vector<1x1x256xf32> to vector<1x4x256xf32>
    %18 = arith.subf %14, %17 : vector<1x4x256xf32>
    %19 = math.exp %18 : vector<1x4x256xf32>
    %cst_8 = arith.constant dense<0.000000e+00> : vector<1x256xf32>
    %20 = vector.multi_reduction <add>, %19, %cst_8 [1] : vector<1x4x256xf32> to vector<1x256xf32>
    %21 = vector.shape_cast %20 : vector<1x256xf32> to vector<1x1x256xf32>
    %22 = tpu.iota {dimensions = array<i32: 1>} : vector<1x4x256xi32>
    %23 = vector.broadcast %4 : vector<1x1x256xi32> to vector<1x4x256xi32>
    %24 = arith.cmpi eq, %22, %23 : vector<1x4x256xi32>
    %cst_9 = arith.constant 0.000000e+00 : f32
    %25 = vector.broadcast %cst_9 : f32 to vector<1x4x256xf32>
    %26 = arith.select %24, %18, %25 : vector<1x4x256xi1>, vector<1x4x256xf32>
    %cst_10 = arith.constant dense<0.000000e+00> : vector<1x256xf32>
    %27 = vector.multi_reduction <add>, %26, %cst_10 [1] : vector<1x4x256xf32> to vector<1x256xf32>
    %28 = vector.shape_cast %27 : vector<1x256xf32> to vector<1x1x256xf32>
    %cst_11 = arith.constant 0.000000e+00 : f32
    %29 = vector.broadcast %cst_11 : f32 to vector<1x4x256xf32>
    %30 = arith.select %24, %19, %29 : vector<1x4x256xi1>, vector<1x4x256xf32>
    %cst_12 = arith.constant dense<0.000000e+00> : vector<1x256xf32>
    %31 = vector.multi_reduction <add>, %30, %cst_12 [1] : vector<1x4x256xf32> to vector<1x256xf32>
    %32 = vector.shape_cast %31 : vector<1x256xf32> to vector<1x1x256xf32>
    %33 = math.log %21 : vector<1x1x256xf32>
    %34 = arith.subf %28, %33 : vector<1x1x256xf32>
    %35 = arith.divf %32, %21 : vector<1x1x256xf32>
    %cst_13 = arith.constant 1.000000e+00 : f32
    %36 = vector.broadcast %cst_13 : f32 to vector<1x1x256xf32>
    %37 = arith.subf %36, %35 : vector<1x1x256xf32>
    %cst_14 = arith.constant 1.000000e+00 : f32
    %38 = vector.broadcast %cst_14 : f32 to vector<1x1x256xf32>
    %39 = arith.mulf %38, %37 : vector<1x1x256xf32>
    %40 = arith.mulf %39, %37 : vector<1x1x256xf32>
    %cst_15 = arith.constant -1.000000e+00 : f32
    %41 = vector.broadcast %cst_15 : f32 to vector<1x1x256xf32>
    %42 = arith.mulf %41, %40 : vector<1x1x256xf32>
    %43 = arith.mulf %42, %34 : vector<1x1x256xf32>
    %c0_16 = arith.constant 0 : index
    %c0_17 = arith.constant 0 : index
    %c0_18 = arith.constant 0 : index
    %44 = vector.load %arg4[%c0_16, %c0_17, %c0_18] : memref<1x1x256xf32, #tpu.memory_space<vmem>>, vector<1x1x256xf32>
    %cst_19 = arith.constant 0.000000e+00 : f32
    %45 = vector.broadcast %cst_19 : f32 to vector<1x1x256xf32>
    %46 = arith.select %10, %43, %45 : vector<1x1x256xi1>, vector<1x1x256xf32>
    %47 = arith.addf %44, %46 : vector<1x1x256xf32>
    %c0_20 = arith.constant 0 : index
    %c0_21 = arith.constant 0 : index
    %c0_22 = arith.constant 0 : index
    %48 = vector.load %arg4[%c0_20, %c0_21, %c0_22] : memref<1x1x256xf32, #tpu.memory_space<vmem>>, vector<1x1x256xf32>
    tpu.vector_store %arg4[%c0_20, %c0_21, %c0_22], %47 {strides = array<i32>} : memref<1x1x256xf32, #tpu.memory_space<vmem>>, vector<1x1x256xf32>,
    return
  }
  func.func @transform_0(%arg0: i32, %arg1: i32) -> (i32, i32, i32) {
    %c0_i32 = arith.constant 0 : i32
    %c0_i32_0 = arith.constant 0 : i32
    return %arg0, %c0_i32, %arg1 : i32, i32, i32
  }
  func.func @transform_1(%arg0: i32, %arg1: i32) -> (i32, i32, i32) {
    %c0_i32 = arith.constant 0 : i32
    %c0_i32_0 = arith.constant 0 : i32
    return %arg0, %c0_i32, %arg1 : i32, i32, i32
  }
  func.func @transform_2(%arg0: i32, %arg1: i32) -> (i32, i32, i32) {
    %c0_i32 = arith.constant 0 : i32
    %c0_i32_0 = arith.constant 0 : i32
    %c0_i32_1 = arith.constant 0 : i32
    return %arg0, %c0_i32, %c0_i32_0 : i32, i32, i32
  }
}

</mosaic_0001>

<bundles_post_ra>
// kernel: tpu_custom_call.1
= control target key start
LH: loop header
LB: loop body
LE: loop exit
PB: predicated region body
PF: predicated region fallthrough
CT: control target
= control target key end

     0   :  { %7 = vsyncpa [#allocation3], 0  ;;  %s950_s0 = inlined_call_operand.hbm [shape: f32[2,4,256], index: 0, kind: input, shape index: {}]   ;;  %s951_s1 = inlined_call_operand.hbm [shape: s32[2,1,256], index: 1, kind: input, shape index: {}]   ;;  %s952_s2 = inlined_call_operand.hbm [shape: f32[2,1,256], index: 2, kind: output, shape index: {}]  }
   0x1   :  { %9 = vsyncpa [#allocation3 + $0x1], 0 }
   0x2   :  { %10 = vsyncpa [#allocation6], 0 }
   0x3   :  { %12 = vsyncpa [#allocation6 + $0x1], 0 }
   0x4   :  { %13 = vsyncpa [#allocation4], 0 }
   0x5   :  { %15 = vsyncpa [#allocation4 + $0x1], 0  ;;  %s771_s9 = smov 0   ;;  %s773_s10 = smov 0  }
   0x6   :  { %s775_s11 = smov 0   ;;  %s777_s12 = smov 0  }
   0x7   :  { %s779_s13 = smov 0   ;;  %s781_s14 = smov 0  }
   0x8 LB: > { %s509_s15 = sadd.s32 4294967295, %s753_s14   ;;  %s510_s16 = sadd.s32 4294967294, %s753_s14   ;;  %s753_s14 = sphi %s781_s14, %s21_s14   ;;  %s749_s13 = sphi %s779_s13, %s968_s13   ;;  %s745_s12 = sphi %s777_s12, %s967_s12   ;;  %s741_s11 = sphi %s775_s11, %s966_s11   ;;  %s737_s10 = sphi %s773_s10, %s965_s10   ;;  %s733_s9 = sphi %s771_s9, %s964_s9  }
   0x9   : > { %s33_s17 = sadd.s32 1, %s749_s13  ;;  %s42_s18 = sadd.s32 1, %s741_s11 }
   0xa   : > { %p35_p0 = scmp.ge.s32.totalorder %s33_s17, 2  ;;  %p49_p1 = scmp.ne.s32.totalorder %s741_s11, %s737_s10 }
   0xb   : > { %p50_p2 = scmp.eq.s32.totalorder %s753_s14, 0  ;;  %p55_p3 = scmp.ne.s32.totalorder %s737_s10, %s733_s9 }
   0xc   : > { %s970_s17 = smov (%p35_p0, %s33_s17), 0  ;;  %p56_p5 = scmp.eq.s32.totalorder %s509_s15, 0 }
   0xd   : > { %p812_p4 = por %p50_p2, %p49_p1  ;;  %s37_s20 = ssub.s32 %s749_s13, %s970_s17 }
   0xe   : > { %p107_p6 = scmp.eq.s32.totalorder %s509_s15, 1  ;;  %p40_p7 = scmp.eq.s32.totalorder %s37_s20, 0 }
   0xf   : > { %p818_p8 = por %p56_p5, %p55_p3  ;;  %p113_p10 = scmp.eq.s32.totalorder %s510_s16, 1 }
  0x10   : > { %p822_p9 = por %p107_p6, %p49_p1  ;;  %p512_p12 = scmp.ge.s32.totalorder %s753_s14, 2 }
  0x11   : > { %s827_s23 = scalar_select %p40_p7, %s741_s11, %s42_s18  }
  0x12   : > { %p829_p11 = por %p113_p10, %p55_p3  ;;  %p544_p13 = scmp.lt.s32.totalorder %s753_s14, 2 }
  0x13   : > { %s133_s25 = sand.u32 1, %s741_s11   ;;  %s526_s27 = sshll.u32 %s749_s13, 3 }
  0x14   : > { %s513_s26 = sshll.u32 %s133_s25, 3  ;;  %s144_s30 = scalar_lea.hbm %s950_s0, %s526_s27 }
  0x15   : > { %s137_s3 = scalar_lea.vmem [#allocation2], %s513_s26  ;;  %s146_s5 = sshll.u32 %s144_s30, 4  ;;  %s147_s5 = int_to_ptr.hbm [resolvable:$true] %s146_s5 }
  0x16   : > { %s148_s4 = sshll.u32 %s137_s3, 4  ;;  %p842_p0 = pnand %p544_p13, %p812_p4  ;;  %s149_s4 = int_to_ptr.vmem [resolvable:$true] %s148_s4 }
  0x17   : > { %p518_p1 = scmp.ge.s32.totalorder %s753_s14, 1  ;;  %p174_p2 = scmp.lt.s32.totalorder %s753_s14, 3 }
  0x18   : > { %s134_s7 = scalar_lea.sflag [#allocation3], %s133_s25  ;;  %s516_s8 = sshll.u32 %s133_s25, 1 }
  0x19   : > { %536 = dma.hbm_to_vmem [thread:$0]  (!%p842_p0), %s147_s5, 128, %s149_s4, %s134_s7  }
  0x1a   : > { %p175_p3 = pnand %p518_p1, %p174_p2  ;;  %s517_s15 = sshll.u32 %s749_s13, 1 }
  0x1b   : > { %s165_s20 = scalar_lea.hbm %s951_s1, %s517_s15  ;;  %s159_s26 = scalar_lea.vmem [#allocation5], %s516_s8 }
  0x1c   : > { %s169_s19 = sshll.u32 %s159_s26, 4  ;;  %s167_s27 = sshll.u32 %s165_s20, 4  ;;  %s170_s19 = int_to_ptr.vmem [resolvable:$true] %s169_s19  ;;  %s168_s27 = int_to_ptr.hbm [resolvable:$true] %s167_s27 }
  0x1d   : > { %s156_s28 = scalar_lea.sflag [#allocation6], %s133_s25  ;;  %178 = sbr.rel (%p175_p3) target bundleno = 120 (0x78), region = 28 }
  0x1e   : > { %539 = dma.hbm_to_vmem [thread:$0]  (!%p842_p0), %s168_s27, 32, %s170_s19, %s156_s28  }
  0x1f   : > { %s857_s29 = sand.u32 (!%p175_p3), 1, %s737_s10  }
  0x20   : > { %s519_s30 = sshll.u32 (!%p175_p3), %s857_s29, 3  ;;  %s181_s3 = scalar_lea.sflag (!%p175_p3), [#allocation3], %s857_s29 }
  0x21   : > { %s184_s4 = scalar_lea.vmem (!%p175_p3), [#allocation2], %s519_s30 }
  0x22   : > { %720 = dma.done.wait (%p818_p8), %s181_s3, 128  }
  0x23   : > { %722 = vsyncadd (%p818_p8), %s181_s3, 4294967168  ;;  %s520_s25 = sshll.u32 %s857_s29, 1  ;;  %s191_s5 = scalar_lea.sflag [#allocation6], %s857_s29 }
  0x24   : > { %s867_s6 = scalar_lea.vmem [#allocation5], %s520_s25 }
  0x25   : > { %724 = dma.done.wait (%p818_p8), %s191_s5, 32  }
  0x26   : > { %726 = vsyncadd (%p818_p8), %s191_s5, 4294967264  ;;  %v227_v0 = vlaneseq  ;;  %s877_s7 = scalar_lea.vmem [#allocation7], %s520_s25  ;;  %v755_v2 = vmov 0.0   ;;  %v232_v3 = vld [vmem:[%s184_s4] sm:$0xff]  ;;  %vm255_vm1 = vcmask 1043456   ;;  %s523_s21 = sshll.u32 %s745_s12, 1 }
  0x27   : > { %248 = vst [vmem:[#allocation1] ss:$2 sm:$0xff] %v232_v3  ;;  %v233_v24 = vld [vmem:[%s867_s6] sm:$0x3]  ;;  %s398_s16 = scalar_lea.hbm %s952_s2, %s523_s21  ;;  %vm378_vm12 = vcmask 1040384   ;;  %s400_s18 = sshll.u32 %s877_s7, 4  ;;  %s401_s18 = int_to_ptr.vmem [resolvable:$true] %s400_s18 }
  0x28   : > { %vm873_vm0 = vcmp.lt.s32.totalorder %v227_v0, 256  ;;  %v291_v25 = vshrl.u32 %v227_v0, 7  ;;  %v292_v26 = vperm.slane %v233_v24, 0  ;;  %v293_v30 = vperm.slane %v233_v24, 1  ;;  %s402_s20 = sshll.u32 %s398_s16, 4  ;;  %s388_s12 = scalar_lea.sflag [#allocation4], %s857_s29  ;;  %s403_s20 = int_to_ptr.hbm [resolvable:$true] %s402_s20 }
  0x29   : > { %231 = vst.msk [vmem:[%s877_s7] sm:$0x3] %vm873_vm0, %v755_v2  ;;  %s681_s26 = sshra.s32 %s403_s20, 4  ;;  %s687_s30 = scalar_lea.hbm %s952_s2, 4  ;;  %s682_s26 = int_to_ptr.hbm [resolvable:$true] %s681_s26 }
  0x2a   : > { %vm887_vm2 = vcmp.eq.s32.totalorder %v291_v25, %v292_v26  ;;  %vm893_vm3 = vcmp.eq.s32.totalorder %v291_v25, %v293_v30  ;;  %s683_s19 = scalar_lea.hbm %s682_s26, 2  ;;  %p688_p7 = scmp.lt.s32.totalorder %s682_s26, %s952_s2 }
  0x2b   : > { %p684_p4 = scmp.ne.s32.totalorder %s682_s26, %s683_s19  ;;  %p689_p8 = scmp.lt.s32.totalorder %s687_s30, %s683_s19 }
  0x2d   : > { %p685_p5 = pnand %p684_p4, %p822_p9  ;;  %p690_p10 = por %p689_p8, %p688_p7 }
  0x2e   : > { %v249_v4 = vld.sshfl [vmem:[#allocation1] sm:$0xff pattern:$0x75316420]  ;;  %v250_v5 = vld.sshfl [vmem:[#allocation1 + $0x8] sm:$0xff pattern:$0x75316420] }
  0x2f   : > { %v256_v6 = vsel %vm255_vm1, %v249_v4, -inf  ;;  %v263_v7 = vsel %vm255_vm1, %v250_v5, -inf  ;;  %p686_p6 = pneg %p685_p5 }
  0x30   : > { %v257_v8 = vrot.slane %v256_v6, 4  ;;  %v264_v9 = vrot.slane %v263_v7, 4 }
  0x31   : > { %p691_p13 = pnand %p690_p10, %p686_p6 }
  0x32   : > { %v258_v10 = vmax.f32 %v256_v6, %v257_v8  ;;  %v265_v11 = vmax.f32 %v263_v7, %v264_v9 }
  0x34   : > { %v259_v12 = vrot.slane %v258_v10, 2  ;;  %v266_v13 = vrot.slane %v265_v11, 2 }
  0x36   : > { %v260_v14 = vmax.f32 %v258_v10, %v259_v12  ;;  %v267_v15 = vmax.f32 %v265_v11, %v266_v13 }
  0x38   : > { %v261_v16 = vrot.slane %v260_v14, 1  ;;  %v268_v17 = vrot.slane %v267_v15, 1 }
  0x3a   : > { %v262_v18 = vmax.f32 %v260_v14, %v261_v16  ;;  %v269_v19 = vmax.f32 %v267_v15, %v268_v17 }
  0x3c   : > { %v270_v20 = vsub.f32 %v249_v4, %v262_v18  ;;  %v271_v21 = vsub.f32 %v250_v5, %v269_v19 }
  0x3e   : > { %v272_v22 = vmul.f32 1.442695, %v270_v20  ;;  %v274_v23 = vmul.f32 1.442695, %v271_v21  ;;  %v296_v49 = vsel %vm887_vm2, %v270_v20, 0.0  ;;  %v297_v50 = vsel %vm893_vm3, %v271_v21, 0.0 }
  0x3f   : > { %v298_v54 = vsel %vm255_vm1, %v296_v49, 0.0  ;;  %v305_v55 = vsel %vm255_vm1, %v297_v50, 0.0 }
  0x40   : > { %595 = vpow2.f32 %v272_v22  ;;  %v299_v58 = vrot.slane %v298_v54, 4  ;;  %v306_v59 = vrot.slane %v305_v55, 4 }
  0x41   : > { %597 = vpow2.f32 %v274_v23 }
  0x42   : > { %v300_v62 = vadd.f32 %v299_v58, %v298_v54  ;;  %v307_v63 = vadd.f32 %v306_v59, %v305_v55 }
  0x44   : > { %v301_v7 = vrot.slane %v300_v62, 2  ;;  %v308_v8 = vrot.slane %v307_v63, 2 }
  0x46   : > { %v596_v27 = vpop.eup %595  ;;  %v302_v19 = vadd.f32 %v301_v7, %v300_v62  ;;  %v309_v21 = vadd.f32 %v308_v8, %v307_v63 }
  0x47   : > { %v598_v28 = vpop.eup %597  ;;  %v276_v29 = vsel %vm255_vm1, %v596_v27, 0.0  ;;  %v312_v36 = vsel %vm887_vm2, %v596_v27, 0.0 }
  0x48   : > { %v277_v31 = vrot.slane %v276_v29, 4  ;;  %v283_v32 = vsel %vm255_vm1, %v598_v28, 0.0  ;;  %v313_v40 = vsel %vm893_vm3, %v598_v28, 0.0  ;;  %v314_v42 = vsel %vm255_vm1, %v312_v36, 0.0 }
  0x49   : > { %v284_v33 = vrot.slane %v283_v32, 4  ;;  %v321_v45 = vsel %vm255_vm1, %v313_v40, 0.0  ;;  %v315_v47 = vrot.slane %v314_v42, 4 }
  0x4a   : > { %v278_v35 = vadd.f32 %v277_v31, %v276_v29  ;;  %v322_v52 = vrot.slane %v321_v45, 4 }
  0x4b   : > { %v285_v37 = vadd.f32 %v284_v33, %v283_v32  ;;  %v316_v56 = vadd.f32 %v315_v47, %v314_v42  ;;  %v310_v33 = vrot.slane %v309_v21, 1 }
  0x4c   : > { %v279_v39 = vrot.slane %v278_v35, 2  ;;  %v323_v57 = vadd.f32 %v322_v52, %v321_v45 }
  0x4d   : > { %v286_v41 = vrot.slane %v285_v37, 2  ;;  %v317_v60 = vrot.slane %v316_v56, 2 }
  0x4e   : > { %v280_v43 = vadd.f32 %v279_v39, %v278_v35  ;;  %v324_v61 = vrot.slane %v323_v57, 2 }
  0x4f   : > { %v287_v44 = vadd.f32 %v286_v41, %v285_v37  ;;  %v318_v2 = vadd.f32 %v317_v60, %v316_v56  ;;  %v303_v37 = vrot.slane %v302_v19, 1  ;;  %v311_v41 = vadd.f32 %v310_v33, %v309_v21 }
  0x50   : > { %v281_v46 = vrot.slane %v280_v43, 1  ;;  %v325_v5 = vadd.f32 %v324_v61, %v323_v57 }
  0x51   : > { %v288_v48 = vrot.slane %v287_v44, 1  ;;  %v319_v10 = vrot.slane %v318_v2, 1 }
  0x52   : > { %v282_v51 = vadd.f32 %v281_v46, %v280_v43  ;;  %v326_v16 = vrot.slane %v325_v5, 1 }
  0x53   : > { %v289_v53 = vadd.f32 %v288_v48, %v287_v44  ;;  %v320_v24 = vadd.f32 %v319_v10, %v318_v2  ;;  %v304_v44 = vadd.f32 %v303_v37, %v302_v19 }
  0x54   : > { %599 = vrcp.f32 %v282_v51  ;;  %v345_v11 = vand.u32 2147483648, %v282_v51  ;;  %v343_v14 = vand.u32 2147483647, %v282_v51  ;;  %vm339_vm6 = vweird.f32 %v282_v51 }
  0x55   : > { %601 = vrcp.f32 %v289_v53  ;;  %v360_v15 = vand.u32 2147483648, %v289_v53  ;;  %v358_v18 = vand.u32 2147483647, %v289_v53  ;;  %vm354_vm8 = vweird.f32 %v289_v53 }
  0x56   : > { %603 = vlog2.f32 %v289_v53  ;;  %v346_v22 = vor.u32 1.1754944e-38, %v345_v11  ;;  %vm344_vm9 = vcmp.eq.f32.partialorder %v343_v14, 8.507059e+37  ;;  %v327_v28 = vadd.f32 %v326_v16, %v325_v5 }
  0x57   : > { %605 = vlog2.f32 %v282_v51  ;;  %v361_v26 = vor.u32 1.1754944e-38, %v360_v15  ;;  %vm359_vm11 = vcmp.eq.f32.partialorder %v358_v18, 8.507059e+37 }
  0x5a   : > { %v600_v0 = vpop.eup %599 }
  0x5b   : > { %v602_v3 = vpop.eup %601  ;;  %v335_v4 = vmul.f32 %v600_v0, %v282_v51  ;;  %vm340_vm4 = vweird.f32 %v600_v0  ;;  %v372_v51 = vld [vmem:[%s877_s7] sm:$0x3] }
  0x5c   : > { %v350_v6 = vmul.f32 %v602_v3, %v289_v53  ;;  %vm355_vm5 = vweird.f32 %v602_v3  ;;  %vm341_vm7 = vmor %vm339_vm6, %vm340_vm4  ;;  %v604_v27 = vpop.eup %603 }
  0x5d   : > { %v336_v9 = vsub.f32 1.0, %v335_v4  ;;  %vm356_vm10 = vmor %vm354_vm8, %vm355_vm5  ;;  %v606_v35 = vpop.eup %605  ;;  %v331_v38 = vmul.f32 0.6931472, %v604_v27 }
  0x5e   : > { %v351_v12 = vsub.f32 1.0, %v350_v6  ;;  %v329_v42 = vmul.f32 0.6931472, %v606_v35 }
  0x5f   : > { %v337_v13 = vmul.f32 %v600_v0, %v336_v9  ;;  %v333_v45 = vsub.f32 %v311_v41, %v331_v38 }
  0x60   : > { %v352_v17 = vmul.f32 %v602_v3, %v351_v12  ;;  %v332_v48 = vsub.f32 %v304_v44, %v329_v42 }
  0x61   : > { %v338_v20 = vadd.f32 %v600_v0, %v337_v13 }
  0x62   : > { %v353_v23 = vadd.f32 %v602_v3, %v352_v17 }
  0x63   : > { %v342_v25 = vsel %vm341_vm7, %v600_v0, %v338_v20 }
  0x64   : > { %v347_v29 = vsel %vm344_vm9, %v346_v22, %v342_v25  ;;  %v357_v30 = vsel %vm356_vm10, %v602_v3, %v353_v23 }
  0x65   : > { %v348_v31 = vmul.f32 %v347_v29, %v320_v24  ;;  %v362_v32 = vsel %vm359_vm11, %v361_v26, %v357_v30 }
  0x66   : > { %v363_v34 = vmul.f32 %v362_v32, %v327_v28 }
  0x67   : > { %v364_v36 = vsub.f32 1.0, %v348_v31 }
  0x68   : > { %v365_v39 = vsub.f32 1.0, %v363_v34 }
  0x69   : > { %v366_v40 = vmul.f32 %v364_v36, %v364_v36 }
  0x6a   : > { %v367_v43 = vmul.f32 %v365_v39, %v365_v39 }
  0x6b   : > { %v368_v46 = vmul.f32 -1.0, %v366_v40 }
  0x6c   : > { %v369_v47 = vmul.f32 -1.0, %v367_v43 }
  0x6d   : > { %v370_v50 = vmul.f32 %v368_v46, %v332_v48 }
  0x6e   : > { %v371_v49 = vmul.f32 %v369_v47, %v333_v45 }
  0x70   : > { %v377_v52 = vrot.slane %v371_v49, 7 }
  0x72   : > { %v379_v53 = vsel %vm378_vm12, %v370_v50, %v377_v52 }
  0x73   : > { %v381_v54 = vadd.f32 %v379_v53, %v372_v51 }
  0x75   : > { %386 = vst.msk [vmem:[%s877_s7] sm:$0x3] %vm873_vm0, %v381_v54 }
  0x76   : > { %694 = shalt.err (!%p691_p13)
}
  0x77   : > { %531 = dma.vmem_to_hbm [thread:$0]  (%p822_p9), %s401_s18, 32, %s403_s20, %s388_s12  }
  0x78 PF: > { %s414_s29 = sand.u32 1, %s733_s9   ;;  %p541_p0 = pnand %p512_p12, %p829_p11 }
  0x79   : > { %s415_s25 = scalar_lea.sflag [#allocation4], %s414_s29 }
  0x7a   : > { %p542_p1 = pneg %p541_p0 }
  0x7c   : > { %728 = dma.done.wait (%p542_p1), %s415_s25, 32  }
  0x7d   : > { %730 = vsyncadd (%p542_p1), %s415_s25, 4294967264  ;;  %s21_s14 = sadd.s32 1, %s753_s14   ;;  %s964_s9 = smov %s737_s10 }
  0x7e   : > { %p18_p2 = scmp.ge.s32.totalorder %s21_s14, 4   ;;  %s965_s10 = smov %s741_s11 }
  0x7f   : > { %s966_s11 = smov %s827_s23  ;;  %s967_s12 = smov %s749_s13 }
  0x80   : > { %s968_s13 = smov %s970_s17  ;;  %20 = sbr.rel (!%p18_p2) target bundleno = 8 (0x8), region = 90 }
  0x85   :  { %421 = vsyncpa [#allocation3], 1 }
  0x86   :  { %423 = vsyncpa [#allocation3 + $0x1], 1 }
  0x87   :  { %424 = vsyncpa [#allocation6], 1 }
  0x88   :  { %426 = vsyncpa [#allocation6 + $0x1], 1 }
  0x89   :  { %427 = vsyncpa [#allocation4], 1 }
  0x8a   :  { %429 = vsyncpa [#allocation4 + $0x1], 1 }

</bundles_post_ra>
